<compile_context>
chip_gen: v7x
topology: tpu7x:2x2x1
jax: 0.10.0
libtpu: 0.0.40
codegen_flags: <defaults>
</compile_context>

<pallas_src>
import functools

import jax
import jax.numpy as jnp
from jax import lax
from jax.experimental import pallas as pl
from jax.experimental.pallas import tpu as pltpu

EPS = 1e-5


def _merge_ln_linear_kernel(x_ref, p_ref, w_ref, o_ref, *, flat):
    """Fused 2x2 patch-merge + LayerNorm(4C) + bias-free (4C -> C) projection.

    x_ref: (TN, 2, TW, 2C)  input block; [:,0]=[x0|x2] rows, [:,1]=[x1|x3] rows
    p_ref: (4, 2C) f32      LN params [gamma_top, gamma_bot, beta_top, beta_bot]
    w_ref: (2, 2C, C)       reduction weight halves (input-major), storage dtype
    o_ref: (TN, TW, C)      output block
    flat:  static bool      True  -> flatten (TN,TW)->M, one LN + one matmul
                                     pair (requires TW % 8 == 0, layout no-op)
                            False -> per-w fallback for odd TW
    """
    tn, _, tw, c2 = x_ref.shape
    c = o_ref.shape[-1]
    inv_4c = 1.0 / (2.0 * c2)  # 4C == 2 * (2C)

    g_top = p_ref[0:1, :]
    g_bot = p_ref[1:2, :]
    b_top = p_ref[2:3, :]
    b_bot = p_ref[3:4, :]
    w_top = w_ref[0]
    w_bot = w_ref[1]

    def ln_project(xt, xb):
        # Two-pass LayerNorm over the virtual 4C feature (f32 stats).
        mean = (jnp.sum(xt, -1, keepdims=True)
                + jnp.sum(xb, -1, keepdims=True)) * inv_4c
        dt = xt - mean
        db = xb - mean
        var = (jnp.sum(dt * dt, -1, keepdims=True)
               + jnp.sum(db * db, -1, keepdims=True)) * inv_4c
        inv = lax.rsqrt(var + EPS)
        nt = (dt * inv * g_top + b_top).astype(w_top.dtype)
        nb = (db * inv * g_bot + b_bot).astype(w_bot.dtype)
        acc = jnp.dot(nt, w_top, preferred_element_type=jnp.float32)
        acc = acc + jnp.dot(nb, w_bot, preferred_element_type=jnp.float32)
        return acc

    if flat:
        m = tn * tw
        xt = x_ref[:, 0, :, :].reshape(m, c2).astype(jnp.float32)
        xb = x_ref[:, 1, :, :].reshape(m, c2).astype(jnp.float32)
        acc = ln_project(xt, xb)                       # (M, C), M = TN*TW
        o_ref[...] = acc.reshape(tn, tw, c).astype(o_ref.dtype)
    else:
        # Fallback for TW not a multiple of 8 (e.g. odd Swin resolutions).
        for w in range(tw):
            xt = x_ref[:, 0, w, :].astype(jnp.float32)
            xb = x_ref[:, 1, w, :].astype(jnp.float32)
            o_ref[:, w, :] = ln_project(xt, xb).astype(o_ref.dtype)


def _vmem_limit_bytes():
    """Generation-aware VMEM limit: ~75% of capacity, clamped for safety."""
    cap = 64 * 1024 * 1024  # conservative default (v7x-sized)
    try:
        info = pltpu.get_tpu_info()
        cap = int(getattr(info, "vmem_capacity_bytes", cap))
    except Exception:
        pass
    return max(32 * 1024 * 1024, min(int(cap * 3 // 4), 100 * 1024 * 1024))


def _pick_tiles(n_rows, w2, c, x_bytes, w_bytes, out_bytes, vmem_limit):
    """Choose (tile_n, tw2): (8,128)-legal blocks that fit the VMEM budget."""
    c2 = 2 * c
    # Grid-constant params/weights are still double-buffered by the pipeline.
    # TODO(synk): pipeline_mode=pl.Buffered(1) on the constant specs would halve
    # the resident weight VMEM for large C; left at default for lowering safety.
    resident = 2 * (2 * c2 * c * w_bytes + 4 * c2 * 4)
    margin = 6 * 1024 * 1024                        # compiler internal scratch
    avail = max(vmem_limit - resident - margin, 2 * 1024 * 1024)
    # Per merged (n, w2) row: double-buffered input (2*2C) + output (C) blocks
    # plus the in-kernel f32 working set.
    per_row = (2 * c2 * x_bytes + c * out_bytes) * 2 + (4 * c2 + c) * 4
    max_rows = max(8, int(avail // per_row))
    max_rows = min(max_rows, 8192)                  # keep live ranges sane

    # Prefer tw2 == W2: input and output blocks become single contiguous HBM
    # regions and the j grid axis collapses to one step.
    if w2 <= max_rows:
        tw2 = w2
    else:
        tw2 = 8 if w2 > 8 else w2

    tile_n = int(min(n_rows, max(1, max_rows // tw2)))
    if tile_n >= 8:
        tile_n -= tile_n % 8
    tile_n = max(1, tile_n)

    # Keep >= 2 steps on the parallel N axis so 2-TC parts (v7x) can shard it.
    if -(-n_rows // tile_n) < 2 and n_rows > 8:
        half = ((-(-n_rows // 2) + 7) // 8) * 8
        if 0 < half < n_rows:
            tile_n = half
    return tile_n, tw2


def patch_reconstruction(x, input_resolution, gamma, beta, weight):
    """Pallas implementation of PatchReconstruction.forward.

    x:      (B, L, C) with L == H*W
    gamma:  (4C,)  LayerNorm weight
    beta:   (4C,)  LayerNorm bias
    weight: (C, 4C) nn.Linear weight (PyTorch: out_features x in_features)
    returns (B, L/4, C)
    """
    H, W = input_resolution
    B, L, C = x.shape
    assert L == H * W, f"Input feature has wrong size. Expected {H * W}, got {L}"
    assert H % 2 == 0 and W % 2 == 0, f"Input resolution ({H}*{W}) must be even"
    H2, W2 = H // 2, W // 2
    N = B * H2
    rows = N * W2
    C2, C4 = 2 * C, 4 * C

    # Zero-copy view: (B, H, W, C) -> (B*H2, 2, W2, 2C).
    #   xv[n, 0, w2, :] = [x0 | x2]  (even image rows)
    #   xv[n, 1, w2, :] = [x1 | x3]  (odd image rows)
    xv = x.reshape(N, 2, W2, C2)

    f32 = jnp.float32
    # One-time param permutation into the [x0|x2]/[x1|x3] ordering, packed into
    # a single (4, 2C) array: [gamma_top, gamma_bot, beta_top, beta_bot].
    params = jnp.stack([
        jnp.concatenate([gamma[0:C], gamma[2 * C:3 * C]]),
        jnp.concatenate([gamma[C:2 * C], gamma[3 * C:4 * C]]),
        jnp.concatenate([beta[0:C], beta[2 * C:3 * C]]),
        jnp.concatenate([beta[C:2 * C], beta[3 * C:4 * C]]),
    ]).astype(f32)
    # Reduction weight split per half, input-major: (2, 2C, C), storage dtype so
    # bf16 inputs drive the MXU with bf16 operands.
    # TODO(synk): on v5e with f32 inputs and large C, bf16-casting the weight
    # and normalized activations would roughly halve MXU passes.
    w_halves = jnp.stack([
        jnp.concatenate([weight[:, 0:C], weight[:, 2 * C:3 * C]], axis=1).T,
        jnp.concatenate([weight[:, C:2 * C], weight[:, 3 * C:4 * C]], axis=1).T,
    ]).astype(x.dtype)

    x_bytes = jnp.dtype(x.dtype).itemsize
    w_bytes = jnp.dtype(w_halves.dtype).itemsize
    vmem_limit = _vmem_limit_bytes()
    tile_n, tw2 = _pick_tiles(N, W2, C, x_bytes, w_bytes, x_bytes, vmem_limit)
    flat = (tw2 % 8 == 0)
    grid = (pl.cdiv(N, tile_n), pl.cdiv(W2, tw2))

    cost = pl.CostEstimate(
        flops=2 * rows * C4 * C + 10 * rows * C4,
        transcendentals=rows,
        bytes_accessed=rows * C4 * x_bytes + rows * C * x_bytes
        + 2 * C2 * C * w_bytes + 4 * C2 * 4)

    out = pl.pallas_call(
        functools.partial(_merge_ln_linear_kernel, flat=flat),
        out_shape=jax.ShapeDtypeStruct((N, W2, C), x.dtype),
        grid=grid,
        in_specs=[
            pl.BlockSpec((tile_n, 2, tw2, C2), lambda i, j: (i, 0, j, 0)),  # xv
            pl.BlockSpec((4, C2), lambda i, j: (0, 0)),                     # LN params
            pl.BlockSpec((2, C2, C), lambda i, j: (0, 0, 0)),               # weight halves
        ],
        out_specs=pl.BlockSpec((tile_n, tw2, C), lambda i, j: (i, j, 0)),
        compiler_params=pltpu.CompilerParams(
            dimension_semantics=("parallel", "parallel"),
            vmem_limit_bytes=vmem_limit),
        cost_estimate=cost,
    )(xv, params, w_halves)

    return out.reshape(B, H2 * W2, C)


def _reference(x, input_resolution, gamma, beta, weight):
    """Pure-JAX reference reproducing the PyTorch forward."""
    H, W = input_resolution
    B, L, C = x.shape
    xg = x.reshape(B, H, W, C)
    x0 = xg[:, 0::2, 0::2, :]
    x1 = xg[:, 1::2, 0::2, :]
    x2 = xg[:, 0::2, 1::2, :]
    x3 = xg[:, 1::2, 1::2, :]
    m = jnp.concatenate([x0, x1, x2, x3], axis=-1).reshape(B, -1, 4 * C)
    mean = jnp.mean(m, axis=-1, keepdims=True)
    var = jnp.mean((m - mean) ** 2, axis=-1, keepdims=True)
    mn = (m - mean) / jnp.sqrt(var + EPS) * gamma + beta
    return mn @ weight.T


if __name__ == "__main__":
    # Small shapes consistent with the module: dim=C=32, H=W=16, B=2.
    B, H, W, dim = 2, 16, 16, 32
    L = H * W
    key = jax.random.PRNGKey(0)
    kx, kg, kb, kw = jax.random.split(key, 4)

    x = jax.random.normal(kx, (B, L, dim), dtype=jnp.float32)
    gamma = 1.0 + 0.1 * jax.random.normal(kg, (4 * dim,), dtype=jnp.float32)
    beta = 0.1 * jax.random.normal(kb, (4 * dim,), dtype=jnp.float32)
    weight = jax.random.normal(kw, (dim, 4 * dim), dtype=jnp.float32) * (
        1.0 / jnp.sqrt(4.0 * dim))

    fn = jax.jit(lambda xx, g, b, w: patch_reconstruction(xx, (H, W), g, b, w))
    out = jax.block_until_ready(fn(x, gamma, beta, weight))

    ref = _reference(x, (H, W), gamma, beta, weight)
    assert out.shape == (B, L // 4, dim), out.shape
    max_err = float(jnp.max(jnp.abs(out - ref)))
    assert jnp.allclose(out, ref, atol=1e-4, rtol=1e-4), max_err

    print("KERNEL_OK")
</pallas_src>

<mosaic_0001>
module attributes {stable_mosaic.version = 11 : i64} {
  func.func @_merge_ln_linear_kernel(%arg0: i32, %arg1: i32, %arg2: memref<8x2x8x64xf32, #tpu.memory_space<vmem>>, %arg3: memref<4x64xf32, #tpu.memory_space<vmem>>, %arg4: memref<2x64x32xf32, #tpu.memory_space<vmem>>, %arg5: memref<8x8x32xf32, #tpu.memory_space<vmem>>) attributes {dimension_semantics = [#tpu.dimension_semantics<parallel>, #tpu.dimension_semantics<parallel>], iteration_bounds = array<i64: 2, 1>, scalar_prefetch = 0 : i64, scratch_operands = 0 : i64, tpu.core_type = #tpu.core_type<tc>, window_params = [{transform_indices = @transform_0, window_bounds = array<i64: 8, 2, 8, 64>}, {pipeline_mode = #tpu.pipeline_mode<synchronous>, transform_indices = @transform_1, window_bounds = array<i64: 4, 64>}, {pipeline_mode = #tpu.pipeline_mode<synchronous>, transform_indices = @transform_2, window_bounds = array<i64: 2, 64, 32>}, {transform_indices = @transform_3, window_bounds = array<i64: 8, 8, 32>}]} {
    %c0 = arith.constant 0 : index
    %c0_0 = arith.constant 0 : index
    %0 = vector.load %arg3[%c0, %c0_0] : memref<4x64xf32, #tpu.memory_space<vmem>>, vector<1x64xf32>
    %c1 = arith.constant 1 : index
    %c0_1 = arith.constant 0 : index
    %1 = vector.load %arg3[%c1, %c0_1] : memref<4x64xf32, #tpu.memory_space<vmem>>, vector<1x64xf32>
    %c2 = arith.constant 2 : index
    %c0_2 = arith.constant 0 : index
    %2 = vector.load %arg3[%c2, %c0_2] : memref<4x64xf32, #tpu.memory_space<vmem>>, vector<1x64xf32>
    %c3 = arith.constant 3 : index
    %c0_3 = arith.constant 0 : index
    %3 = vector.load %arg3[%c3, %c0_3] : memref<4x64xf32, #tpu.memory_space<vmem>>, vector<1x64xf32>
    %c0_4 = arith.constant 0 : index
    %c0_5 = arith.constant 0 : index
    %c0_6 = arith.constant 0 : index
    %4 = vector.load %arg4[%c0_4, %c0_5, %c0_6] : memref<2x64x32xf32, #tpu.memory_space<vmem>>, vector<1x64x32xf32>
    %5 = vector.shape_cast %4 : vector<1x64x32xf32> to vector<64x32xf32>
    %c1_7 = arith.constant 1 : index
    %c0_8 = arith.constant 0 : index
    %c0_9 = arith.constant 0 : index
    %6 = vector.load %arg4[%c1_7, %c0_8, %c0_9] : memref<2x64x32xf32, #tpu.memory_space<vmem>>, vector<1x64x32xf32>
    %7 = vector.shape_cast %6 : vector<1x64x32xf32> to vector<64x32xf32>
    %c0_10 = arith.constant 0 : index
    %c0_11 = arith.constant 0 : index
    %c0_12 = arith.constant 0 : index
    %c0_13 = arith.constant 0 : index
    %8 = vector.load %arg2[%c0_10, %c0_11, %c0_12, %c0_13] : memref<8x2x8x64xf32, #tpu.memory_space<vmem>>, vector<8x1x8x64xf32>
    %9 = vector.shape_cast %8 : vector<8x1x8x64xf32> to vector<8x8x64xf32>
    %10 = vector.shape_cast %9 : vector<8x8x64xf32> to vector<64x64xf32>
    %c0_14 = arith.constant 0 : index
    %c1_15 = arith.constant 1 : index
    %c0_16 = arith.constant 0 : index
    %c0_17 = arith.constant 0 : index
    %11 = vector.load %arg2[%c0_14, %c1_15, %c0_16, %c0_17] : memref<8x2x8x64xf32, #tpu.memory_space<vmem>>, vector<8x1x8x64xf32>
    %12 = vector.shape_cast %11 : vector<8x1x8x64xf32> to vector<8x8x64xf32>
    %13 = vector.shape_cast %12 : vector<8x8x64xf32> to vector<64x64xf32>
    %cst = arith.constant dense<0.000000e+00> : vector<64xf32>
    %14 = vector.multi_reduction <add>, %10, %cst [1] : vector<64x64xf32> to vector<64xf32>
    %15 = vector.shape_cast %14 : vector<64xf32> to vector<64x1xf32>
    %cst_18 = arith.constant dense<0.000000e+00> : vector<64xf32>
    %16 = vector.multi_reduction <add>, %13, %cst_18 [1] : vector<64x64xf32> to vector<64xf32>
    %17 = vector.shape_cast %16 : vector<64xf32> to vector<64x1xf32>
    %18 = arith.addf %15, %17 : vector<64x1xf32>
    %cst_19 = arith.constant 7.812500e-03 : f32
    %19 = vector.broadcast %cst_19 : f32 to vector<64x1xf32>
    %20 = arith.mulf %18, %19 : vector<64x1xf32>
    %21 = vector.broadcast %20 : vector<64x1xf32> to vector<64x64xf32>
    %22 = arith.subf %10, %21 : vector<64x64xf32>
    %23 = vector.broadcast %20 : vector<64x1xf32> to vector<64x64xf32>
    %24 = arith.subf %13, %23 : vector<64x64xf32>
    %25 = arith.mulf %22, %22 : vector<64x64xf32>
    %cst_20 = arith.constant dense<0.000000e+00> : vector<64xf32>
    %26 = vector.multi_reduction <add>, %25, %cst_20 [1] : vector<64x64xf32> to vector<64xf32>
    %27 = vector.shape_cast %26 : vector<64xf32> to vector<64x1xf32>
    %28 = arith.mulf %24, %24 : vector<64x64xf32>
    %cst_21 = arith.constant dense<0.000000e+00> : vector<64xf32>
    %29 = vector.multi_reduction <add>, %28, %cst_21 [1] : vector<64x64xf32> to vector<64xf32>
    %30 = vector.shape_cast %29 : vector<64xf32> to vector<64x1xf32>
    %31 = arith.addf %27, %30 : vector<64x1xf32>
    %cst_22 = arith.constant 7.812500e-03 : f32
    %32 = vector.broadcast %cst_22 : f32 to vector<64x1xf32>
    %33 = arith.mulf %31, %32 : vector<64x1xf32>
    %cst_23 = arith.constant 9.99999974E-6 : f32
    %34 = vector.broadcast %cst_23 : f32 to vector<64x1xf32>
    %35 = arith.addf %33, %34 : vector<64x1xf32>
    %36 = math.rsqrt %35 : vector<64x1xf32>
    %37 = vector.broadcast %36 : vector<64x1xf32> to vector<64x64xf32>
    %38 = arith.mulf %22, %37 : vector<64x64xf32>
    %39 = vector.broadcast %0 : vector<1x64xf32> to vector<64x64xf32>
    %40 = arith.mulf %38, %39 : vector<64x64xf32>
    %41 = vector.broadcast %2 : vector<1x64xf32> to vector<64x64xf32>
    %42 = arith.addf %40, %41 : vector<64x64xf32>
    %43 = vector.broadcast %36 : vector<64x1xf32> to vector<64x64xf32>
    %44 = arith.mulf %24, %43 : vector<64x64xf32>
    %45 = vector.broadcast %1 : vector<1x64xf32> to vector<64x64xf32>
    %46 = arith.mulf %44, %45 : vector<64x64xf32>
    %47 = vector.broadcast %3 : vector<1x64xf32> to vector<64x64xf32>
    %48 = arith.addf %46, %47 : vector<64x64xf32>
    %cst_24 = arith.constant dense<0.000000e+00> : vector<64x32xf32>
    %49 = tpu.matmul %42, %5, %cst_24 {dimension_numbers = #tpu.dot_dimension_numbers<[1], [0], [0], [1], [0, 0, 1, 1], [], []>} : vector<64x64xf32>, vector<64x32xf32>, vector<64x32xf32> -> vector<64x32xf32>
    %cst_25 = arith.constant dense<0.000000e+00> : vector<64x32xf32>
    %50 = tpu.matmul %48, %7, %cst_25 {dimension_numbers = #tpu.dot_dimension_numbers<[1], [0], [0], [1], [0, 0, 1, 1], [], []>} : vector<64x64xf32>, vector<64x32xf32>, vector<64x32xf32> -> vector<64x32xf32>
    %51 = arith.addf %49, %50 : vector<64x32xf32>
    %52 = vector.shape_cast %51 : vector<64x32xf32> to vector<8x8x32xf32>
    %c0_26 = arith.constant 0 : index
    %c0_27 = arith.constant 0 : index
    %c0_28 = arith.constant 0 : index
    %53 = vector.load %arg5[%c0_26, %c0_27, %c0_28] : memref<8x8x32xf32, #tpu.memory_space<vmem>>, vector<8x8x32xf32>
    tpu.vector_store %arg5[%c0_26, %c0_27, %c0_28], %52 {strides = array<i32>} : memref<8x8x32xf32, #tpu.memory_space<vmem>>, vector<8x8x32xf32>,
    return
  }
  func.func @transform_0(%arg0: i32, %arg1: i32) -> (i32, i32, i32, i32) {
    %c0_i32 = arith.constant 0 : i32
    %c0_i32_0 = arith.constant 0 : i32
    %c0_i32_1 = arith.constant 0 : i32
    return %arg0, %c0_i32, %arg1, %c0_i32_0 : i32, i32, i32, i32
  }
  func.func @transform_1(%arg0: i32, %arg1: i32) -> (i32, i32) {
    %c0_i32 = arith.constant 0 : i32
    %c0_i32_0 = arith.constant 0 : i32
    %c0_i32_1 = arith.constant 0 : i32
    return %c0_i32, %c0_i32_0 : i32, i32
  }
  func.func @transform_2(%arg0: i32, %arg1: i32) -> (i32, i32, i32) {
    %c0_i32 = arith.constant 0 : i32
    %c0_i32_0 = arith.constant 0 : i32
    %c0_i32_1 = arith.constant 0 : i32
    %c0_i32_2 = arith.constant 0 : i32
    return %c0_i32, %c0_i32_0, %c0_i32_1 : i32, i32, i32
  }
  func.func @transform_3(%arg0: i32, %arg1: i32) -> (i32, i32, i32) {
    %c0_i32 = arith.constant 0 : i32
    %c0_i32_0 = arith.constant 0 : i32
    return %arg0, %arg1, %c0_i32 : i32, i32, i32
  }
}

</mosaic_0001>

<bundles_post_ra>
// kernel: _lambda_.1
= control target key start
LH: loop header
LB: loop body
LE: loop exit
PB: predicated region body
PF: predicated region fallthrough
CT: control target
= control target key end

     0   :  { %s1096_s12 = smov 0   ;;  %s1098_s13 = smov 0   ;;  %s1441_s0 = inlined_call_operand.vmem [shape: f32[16,2,8,64], index: 0, kind: input, shape index: {}]   ;;  %s1442_s1 = inlined_call_operand.vmem [shape: f32[4,64], index: 1, kind: input, shape index: {}]   ;;  %s1443_s2 = inlined_call_operand.vmem [shape: f32[2,64,32], index: 2, kind: input, shape index: {}]   ;;  %s1444_s3 = inlined_call_operand.vmem [shape: f32[16,8,32], index: 3, kind: output, shape index: {}]  }
   0x1   :  { %s1100_s14 = smov 0  }
   0x2 LB: > { %s25_s15 = sadd.s32 1, %s1070_s13  ;;  %p839_p0 = scmp.ge.s32.totalorder %s1074_s14, 1  ;;  %s1074_s14 = sphi %s1100_s14, %s13_s14   ;;  %s1070_s13 = sphi %s1098_s13, %s1446_s13   ;;  %s1066_s12 = sphi %s1096_s12, %s1445_s12  }
   0x3   : > { %p27_p1 = scmp.ge.s32.totalorder %s25_s15, 2  ;;  %p158_p2 = scmp.lt.s32.totalorder %s1074_s14, 3 }
   0x5   : > { %s1448_s15 = smov (%p27_p1, %s25_s15), 0  ;;  %p159_p3 = pnand %p839_p0, %p158_p2 }
   0x6   : > { %s840_s16 = sshll.u32 (!%p159_p3), %s1066_s12, 3  ;;  %vm246_vm0 = vcmask (!%p159_p3), 523264   ;;  %vm745_vm1 = vcmask (!%p159_p3), 261120  }
   0x7   : > { %162 = sbr.rel (%p159_p3) target bundleno = 583 (0x247), region = 32  ;;  %p190_p4 = scmp.lt.s32.totalorder (!%p159_p3), %s840_s16, 15 }
   0xe   : > { %s1450_s16 = smov (!%p190_p4, %s840_s16), 15 }
   0xf   : > { %s883_s17 = sshll.u32 %s1450_s16, 4  ;;  %s844_s11 = sshll.u32 %s1450_s16, 3 }
  0x10   : > { %s1120_s20 = scalar_lea.vmem %s1441_s0, %s883_s17  ;;  %s1414_s18 = scalar_lea.vmem %s1444_s3, %s844_s11 }
  0x11   : > { %v230_v0 = vld [vmem:[%s1120_s20 + $0x10] sm:$0xff]  ;;  %v229_v1 = vld [vmem:[%s1120_s20] sm:$0xff]  ;;  %v854_v2 = vld [vmem:[%s1120_s20 + $0x18] sm:$0xff] }
  0x12   : > { %v250_v3 = vsel %vm246_vm0, %v230_v0, 0.0  ;;  %v247_v4 = vsel %vm246_vm0, %v229_v1, 0.0  ;;  %v853_v5 = vld [vmem:[%s1120_s20 + $0x8] sm:$0xff]  ;;  %v274_v6 = vsel %vm246_vm0, %v854_v2, 0.0  ;;  %v231_v9 = vld [vmem:[%s1120_s20 + $0x20] sm:$0xff]  ;;  %v1138_v12 = vld [vmem:[%s1120_s20 + $0x38] sm:$0xff] }
  0x13   : > { %251 = vadd.xlane.f32.xlu1 %v250_v3  ;;  %248 = vadd.xlane.f32.xlu0 %v247_v4  ;;  %v271_v7 = vsel %vm246_vm0, %v853_v5, 0.0  ;;  %v1131_v8 = vld [vmem:[%s1120_s20 + $0x28] sm:$0xff]  ;;  %v253_v11 = vsel %vm246_vm0, %v231_v9, 0.0  ;;  %v1141_v13 = vld [vmem:[%s1120_s20 + $0x30] sm:$0xff]  ;;  %v280_v14 = vsel %vm246_vm0, %v1138_v12, 0.0  ;;  %v1151_v17 = vld [vmem:[%s1120_s20 + $0x40] sm:$0xff] }
  0x14   : > { %v277_v10 = vsel %vm246_vm0, %v1131_v8, 0.0  ;;  %v256_v15 = vsel %vm246_vm0, %v1141_v13, 0.0  ;;  %v1148_v16 = vld [vmem:[%s1120_s20 + $0x48] sm:$0xff]  ;;  %v259_v19 = vsel %vm246_vm0, %v1151_v17, 0.0  ;;  %v1158_v20 = vld [vmem:[%s1120_s20 + $0x58] sm:$0xff]  ;;  %v1161_v21 = vld [vmem:[%s1120_s20 + $0x50] sm:$0xff] }
  0x15   : > { %v283_v18 = vsel %vm246_vm0, %v1148_v16, 0.0  ;;  %v286_v22 = vsel %vm246_vm0, %v1158_v20, 0.0  ;;  %v262_v23 = vsel %vm246_vm0, %v1161_v21, 0.0  ;;  %v1168_v24 = vld [vmem:[%s1120_s20 + $0x68] sm:$0xff]  ;;  %v1171_v25 = vld [vmem:[%s1120_s20 + $0x60] sm:$0xff]  ;;  %v1178_v28 = vld [vmem:[%s1120_s20 + $0x78] sm:$0xff] }
  0x16   : > { %v289_v26 = vsel %vm246_vm0, %v1168_v24, 0.0  ;;  %v265_v27 = vsel %vm246_vm0, %v1171_v25, 0.0  ;;  %v1181_v29 = vld [vmem:[%s1120_s20 + $0x70] sm:$0xff]  ;;  %v292_v30 = vsel %vm246_vm0, %v1178_v28, 0.0 }
  0x17   : > { %275 = vadd.xlane.f32.xlu1 %v274_v6  ;;  %272 = vadd.xlane.f32.xlu0 %v271_v7  ;;  %v268_v31 = vsel %vm246_vm0, %v1181_v29, 0.0 }
  0x1b   : > { %278 = vadd.xlane.f32.xlu1 %v277_v10  ;;  %254 = vadd.xlane.f32.xlu0 %v253_v11 }
  0x1f   : > { %281 = vadd.xlane.f32.xlu1 %v280_v14  ;;  %257 = vadd.xlane.f32.xlu0 %v256_v15 }
  0x23   : > { %284 = vadd.xlane.f32.xlu1 %v283_v18  ;;  %260 = vadd.xlane.f32.xlu0 %v259_v19 }
  0x27   : > { %287 = vadd.xlane.f32.xlu1 %v286_v22  ;;  %263 = vadd.xlane.f32.xlu0 %v262_v23 }
  0x2b   : > { %290 = vadd.xlane.f32.xlu1 %v289_v26  ;;  %266 = vadd.xlane.f32.xlu0 %v265_v27 }
  0x2f   : > { %293 = vadd.xlane.f32.xlu1 %v292_v30  ;;  %269 = vadd.xlane.f32.xlu0 %v268_v31 }
  0xa0   : > { %v252_v32 = vpop.xlane.xlu1 %251  ;;  %v249_v33 = vpop.xlane.xlu0 %248 }
  0xa4   : > { %v276_v34 = vpop.xlane.xlu1 %275  ;;  %v273_v35 = vpop.xlane.xlu0 %272 }
  0xa5   : > { %v296_v36 = vadd.f32 %v276_v34, %v252_v32  ;;  %v295_v37 = vadd.f32 %v273_v35, %v249_v33 }
  0xa7   : > { %v304_v38 = vmul.f32 0.0078125, %v296_v36  ;;  %v303_v39 = vmul.f32 0.0078125, %v295_v37 }
  0xa8   : > { %v279_v40 = vpop.xlane.xlu1 %278  ;;  %v255_v41 = vpop.xlane.xlu0 %254 }
  0xa9   : > { %v1187_v42 = vsub.f32 %v230_v0, %v304_v38  ;;  %v1189_v43 = vsub.f32 %v854_v2, %v304_v38  ;;  %v1191_v44 = vsub.f32 %v229_v1, %v303_v39  ;;  %v1193_v45 = vsub.f32 %v853_v5, %v303_v39 }
  0xaa   : > { %v297_v46 = vadd.f32 %v279_v40, %v255_v41 }
  0xab   : > { %v359_v47 = vmul.f32 %v1193_v45, %v1193_v45  ;;  %v327_v48 = vmul.f32 %v1191_v44, %v1191_v44  ;;  %v360_v52 = vmul.f32 %v1189_v43, %v1189_v43  ;;  %v328_v56 = vmul.f32 %v1187_v42, %v1187_v42 }
  0xac   : > { %v305_v49 = vmul.f32 0.0078125, %v297_v46  ;;  %v282_v50 = vpop.xlane.xlu1 %281  ;;  %v258_v51 = vpop.xlane.xlu0 %257 }
  0xad   : > { %v367_v53 = vsel %vm246_vm0, %v359_v47, 0.0  ;;  %v335_v54 = vsel %vm246_vm0, %v327_v48, 0.0  ;;  %v298_v55 = vadd.f32 %v282_v50, %v258_v51  ;;  %v370_v60 = vsel %vm246_vm0, %v360_v52, 0.0  ;;  %v212_v52 = vld [vmem:[%s1443_s2] sm:$0xff] }
  0xae   : > { %v1205_v57 = vsub.f32 %v231_v9, %v305_v49  ;;  %v1208_v58 = vsub.f32 %v1131_v8, %v305_v49  ;;  %368 = vadd.xlane.f32.xlu1 %v367_v53  ;;  %336 = vadd.xlane.f32.xlu0 %v335_v54  ;;  %v338_v3 = vsel %vm246_vm0, %v328_v56, 0.0  ;;  %v213_v54 = vld [vmem:[%s1443_s2 + $0x8] sm:$0xff] }
  0xaf   : > { %v306_v59 = vmul.f32 0.0078125, %v298_v55 }
  0xb0   : > { %v285_v61 = vpop.xlane.xlu1 %284  ;;  %v261_v62 = vpop.xlane.xlu0 %260  ;;  %v361_v63 = vmul.f32 %v1208_v58, %v1208_v58  ;;  %v329_v0 = vmul.f32 %v1205_v57, %v1205_v57 }
  0xb1   : > { %v1216_v1 = vsub.f32 %v1141_v13, %v306_v59  ;;  %v1219_v2 = vsub.f32 %v1138_v12, %v306_v59  ;;  %v299_v4 = vadd.f32 %v285_v61, %v261_v62  ;;  %v988_v59 = vpack.c.bf16 %v213_v54, %v212_v52  ;;  %v848_v61 = vld [vmem:[%s1443_s2 + $0x58] sm:$0xff]  ;;  %v214_v62 = vld [vmem:[%s1443_s2 + $0x10] sm:$0xff]  ;;  %v1329_v52 = vld [vmem:[%s1442_s1 + $0x1] ss:$0 sm:$0xff] }
  0xb2   : > { %371 = vadd.xlane.f32.xlu1 %v370_v60  ;;  %339 = vadd.xlane.f32.xlu0 %v338_v3  ;;  %v373_v5 = vsel %vm246_vm0, %v361_v63, 0.0  ;;  %v341_v7 = vsel %vm246_vm0, %v329_v0, 0.0  ;;  %v847_v60 = vld [vmem:[%s1443_s2 + $0x50] sm:$0xff]  ;;  %v215_v0 = vld [vmem:[%s1443_s2 + $0x18] sm:$0xff] }
  0xb3   : > { %v307_v6 = vmul.f32 0.0078125, %v299_v4  ;;  %v362_v8 = vmul.f32 %v1219_v2, %v1219_v2  ;;  %v330_v9 = vmul.f32 %v1216_v1, %v1216_v1  ;;  %989 = vmatprep.subr.bf16.mxu0 %v988_v59  ;;  %v976_v63 = vpack.c.bf16 %v848_v61, %v847_v60  ;;  %v849_v4 = vld [vmem:[%s1443_s2 + $0x60] sm:$0xff] }
  0xb4   : > { %v288_v10 = vpop.xlane.xlu1 %287  ;;  %v264_v11 = vpop.xlane.xlu0 %263  ;;  %991 = vmatpush3.bf16.msra.mxu0 %v988_v59  ;;  %v992_v3 = vpack.c.bf16 %v215_v0, %v214_v62  ;;  %v1341_v59 = vld [vmem:[%s1442_s1 + $0x3] ss:$0 sm:$0xff]  ;;  %v1346_v60 = vld [vmem:[%s1442_s1 + $0x2] ss:$0 sm:$0xff] }
  0xb5   : > { %v1229_v12 = vsub.f32 %v1151_v17, %v307_v6  ;;  %v1232_v13 = vsub.f32 %v1148_v16, %v307_v6  ;;  %v300_v14 = vadd.f32 %v288_v10, %v264_v11  ;;  %v376_v15 = vsel %vm246_vm0, %v362_v8, 0.0  ;;  %v216_v6 = vld [vmem:[%s1443_s2 + $0x20] sm:$0xff]  ;;  %v217_v8 = vld [vmem:[%s1443_s2 + $0x28] sm:$0xff]  ;;  %v851_v10 = vld [vmem:[%s1443_s2 + $0x70] sm:$0xff] }
  0xb6   : > { %374 = vadd.xlane.f32.xlu1 %v373_v5  ;;  %342 = vadd.xlane.f32.xlu0 %v341_v7  ;;  %v344_v19 = vsel %vm246_vm0, %v330_v9, 0.0  ;;  %v850_v5 = vld [vmem:[%s1443_s2 + $0x68] sm:$0xff]  ;;  %v996_v9 = vpack.c.bf16 %v217_v8, %v216_v6  ;;  %v852_v11 = vld [vmem:[%s1443_s2 + $0x78] sm:$0xff] }
  0xb7   : > { %v308_v18 = vmul.f32 0.0078125, %v300_v14  ;;  %v363_v22 = vmul.f32 %v1232_v13, %v1232_v13  ;;  %v331_v23 = vmul.f32 %v1229_v12, %v1229_v12  ;;  %993 = vmatprep.subr.bf16.mxu0 %v992_v3  ;;  %v980_v7 = vpack.c.bf16 %v850_v5, %v849_v4  ;;  %v218_v14 = vld [vmem:[%s1443_s2 + $0x30] sm:$0xff] }
  0xb8   : > { %v291_v26 = vpop.xlane.xlu1 %290  ;;  %v267_v17 = vpop.xlane.xlu0 %266  ;;  %995 = vmatpush3.bf16.msra.mxu0 %v992_v3 }
  0xb9   : > { %v1241_v27 = vsub.f32 %v1161_v21, %v308_v18  ;;  %v1244_v16 = vsub.f32 %v1158_v20, %v308_v18  ;;  %v301_v30 = vadd.f32 %v291_v26, %v267_v17  ;;  %v379_v31 = vsel %vm246_vm0, %v363_v22, 0.0  ;;  %997 = vmatprep.subr.bf16.mxu0 %v996_v9  ;;  %v219_v18 = vld [vmem:[%s1443_s2 + $0x38] sm:$0xff] }
  0xba   : > { %377 = vadd.xlane.f32.xlu1 %v376_v15  ;;  %345 = vadd.xlane.f32.xlu0 %v344_v19  ;;  %v347_v33 = vsel %vm246_vm0, %v331_v23, 0.0  ;;  %v984_v15 = vpack.c.bf16 %v852_v11, %v851_v10  ;;  %v1000_v19 = vpack.c.bf16 %v219_v18, %v218_v14 }
  0xbb   : > { %v309_v32 = vmul.f32 0.0078125, %v301_v30  ;;  %v364_v34 = vmul.f32 %v1244_v16, %v1244_v16  ;;  %v332_v35 = vmul.f32 %v1241_v27, %v1241_v27 }
  0xbc   : > { %v294_v36 = vpop.xlane.xlu1 %293  ;;  %v270_v21 = vpop.xlane.xlu0 %269  ;;  %999 = vmatpush3.bf16.msra.mxu0 %v996_v9 }
  0xbd   : > { %v1253_v37 = vsub.f32 %v1171_v25, %v309_v32  ;;  %v1256_v20 = vsub.f32 %v1168_v24, %v309_v32  ;;  %v302_v38 = vadd.f32 %v294_v36, %v270_v21  ;;  %v382_v39 = vsel %vm246_vm0, %v364_v34, 0.0  ;;  %1001 = vmatprep.subr.bf16.mxu0 %v1000_v19 }
  0xbe   : > { %380 = vadd.xlane.f32.xlu1 %v379_v31  ;;  %348 = vadd.xlane.f32.xlu0 %v347_v33  ;;  %v350_v41 = vsel %vm246_vm0, %v332_v35, 0.0 }
  0xbf   : > { %v310_v40 = vmul.f32 0.0078125, %v302_v38  ;;  %v365_v46 = vmul.f32 %v1256_v20, %v1256_v20  ;;  %v333_v47 = vmul.f32 %v1253_v37, %v1253_v37 }
  0xc0   : > { %1003 = vmatpush3.bf16.msra.mxu0 %v1000_v19 }
  0xc1   : > { %v1265_v25 = vsub.f32 %v1181_v29, %v310_v40  ;;  %v1268_v24 = vsub.f32 %v1178_v28, %v310_v40  ;;  %v385_v48 = vsel %vm246_vm0, %v365_v46, 0.0  ;;  %v353_v49 = vsel %vm246_vm0, %v333_v47, 0.0  ;;  %v845_v29 = vld [vmem:[%s1443_s2 + $0x40] sm:$0xff]  ;;  %v846_v28 = vld [vmem:[%s1443_s2 + $0x48] sm:$0xff] }
  0xc2   : > { %383 = vadd.xlane.f32.xlu1 %v382_v39  ;;  %351 = vadd.xlane.f32.xlu0 %v350_v41  ;;  %v972_v53 = vpack.c.bf16 %v846_v28, %v845_v29 }
  0xc3   : > { %v366_v50 = vmul.f32 %v1268_v24, %v1268_v24  ;;  %v334_v51 = vmul.f32 %v1265_v25, %v1265_v25 }
  0xc4   : > { %973 = vmatprep.subr.bf16.mxu1 %v972_v53 }
  0xc5   : > { %v388_v55 = vsel %vm246_vm0, %v366_v50, 0.0  ;;  %v356_v56 = vsel %vm246_vm0, %v334_v51, 0.0  ;;  %975 = vmatpush3.bf16.msra.mxu1 %v972_v53  ;;  %v1334_v53 = vld [vmem:[%s1442_s1] ss:$0 sm:$0xff] }
  0xc6   : > { %386 = vadd.xlane.f32.xlu1 %v385_v48  ;;  %354 = vadd.xlane.f32.xlu0 %v353_v49 }
  0xc7   : > { %977 = vmatprep.subr.bf16.mxu1 %v976_v63 }
  0xc9   : > { %979 = vmatpush3.bf16.msra.mxu1 %v976_v63 }
  0xca   : > { %389 = vadd.xlane.f32.xlu1 %v388_v55  ;;  %357 = vadd.xlane.f32.xlu0 %v356_v56 }
  0xcb   : > { %981 = vmatprep.subr.bf16.mxu1 %v980_v7 }
  0xcd   : > { %983 = vmatpush3.bf16.msra.mxu1 %v980_v7 }
  0xce   : > { %985 = vmatprep.subr.bf16.mxu1 %v984_v15 }
  0xd1   : > { %987 = vmatpush3.bf16.msra.mxu1 %v984_v15 }
 0x13b   : > { %v369_v22 = vpop.xlane.xlu1 %368  ;;  %v337_v23 = vpop.xlane.xlu0 %336 }
 0x13c   : > { %v391_v26 = vadd.f32 %v369_v22, %v337_v23 }
 0x13e   : > { %v399_v17 = vmul.f32 0.0078125, %v391_v26 }
 0x13f   : > { %v372_v30 = vpop.xlane.xlu1 %371  ;;  %v340_v31 = vpop.xlane.xlu0 %339 }
 0x140   : > { %v407_v32 = vadd.f32 1e-05, %v399_v17  ;;  %v392_v33 = vadd.f32 %v372_v30, %v340_v31 }
 0x142   : > { %1036 = vrsqrt.f32 %v407_v32  ;;  %v400_v34 = vmul.f32 0.0078125, %v392_v33 }
 0x143   : > { %v375_v35 = vpop.xlane.xlu1 %374  ;;  %v343_v36 = vpop.xlane.xlu0 %342 }
 0x144   : > { %v408_v21 = vadd.f32 1e-05, %v400_v34  ;;  %v393_v38 = vadd.f32 %v375_v35, %v343_v36 }
 0x146   : > { %1038 = vrsqrt.f32 %v408_v21  ;;  %v401_v39 = vmul.f32 0.0078125, %v393_v38 }
 0x147   : > { %v378_v40 = vpop.xlane.xlu1 %377  ;;  %v346_v41 = vpop.xlane.xlu0 %345 }
 0x148   : > { %v409_v46 = vadd.f32 1e-05, %v401_v39  ;;  %v394_v47 = vadd.f32 %v378_v40, %v346_v41 }
 0x14a   : > { %1040 = vrsqrt.f32 %v409_v46  ;;  %v402_v48 = vmul.f32 0.0078125, %v394_v47 }
 0x14b   : > { %v381_v49 = vpop.xlane.xlu1 %380  ;;  %v349_v50 = vpop.xlane.xlu0 %348 }
 0x14c   : > { %v1037_v51 = vpop.eup %1036  ;;  %v410_v29 = vadd.f32 1e-05, %v402_v48  ;;  %v395_v28 = vadd.f32 %v381_v49, %v349_v50 }
 0x14d   : > { %v455_v54 = vmul.f32 %v1037_v51, %v1193_v45  ;;  %v423_v55 = vmul.f32 %v1037_v51, %v1191_v44 }
 0x14e   : > { %1042 = vrsqrt.f32 %v410_v29  ;;  %v403_v56 = vmul.f32 0.0078125, %v395_v28 }
 0x14f   : > { %v384_v61 = vpop.xlane.xlu1 %383  ;;  %v352_v62 = vpop.xlane.xlu0 %351  ;;  %v467_v63 = vmul.f32 %v1329_v52, %v455_v54  ;;  %v435_v45 = vmul.f32 %v1334_v53, %v423_v55 }
 0x150   : > { %v1039_v0 = vpop.eup %1038  ;;  %v411_v44 = vadd.f32 1e-05, %v403_v56  ;;  %v396_v3 = vadd.f32 %v384_v61, %v352_v62 }
 0x151   : > { %v479_v4 = vadd.f32 %v1341_v59, %v467_v63  ;;  %v447_v5 = vadd.f32 %v1346_v60, %v435_v45  ;;  %v456_v6 = vmul.f32 %v1039_v0, %v1189_v43  ;;  %v424_v7 = vmul.f32 %v1039_v0, %v1187_v42 }
 0x152   : > { %1044 = vrsqrt.f32 %v411_v44  ;;  %v404_v8 = vmul.f32 0.0078125, %v396_v3 }
 0x153   : > { %v387_v9 = vpop.xlane.xlu1 %386  ;;  %932 = vmatprep.mubr.msk.f32.mxu1 %vm246_vm0, %v479_v4  ;;  %960 = vmatprep.mubr.msk.f32.mxu0 %vm246_vm0, %v447_v5  ;;  %v355_v10 = vpop.xlane.xlu0 %354  ;;  %v468_v11 = vmul.f32 %v1329_v52, %v456_v6  ;;  %v436_v14 = vmul.f32 %v1334_v53, %v424_v7 }
 0x154   : > { %v1041_v15 = vpop.eup %1040  ;;  %v412_v18 = vadd.f32 1e-05, %v404_v8  ;;  %v397_v19 = vadd.f32 %v387_v9, %v355_v10 }
 0x155   : > { %v480_v22 = vadd.f32 %v1341_v59, %v468_v11  ;;  %v448_v43 = vadd.f32 %v1346_v60, %v436_v14  ;;  %v457_v42 = vmul.f32 %v1041_v15, %v1208_v58  ;;  %v425_v23 = vmul.f32 %v1041_v15, %v1205_v57 }
 0x156   : > { %1046 = vrsqrt.f32 %v412_v18  ;;  %v405_v26 = vmul.f32 0.0078125, %v397_v19 }
 0x157   : > { %v390_v17 = vpop.xlane.xlu1 %389  ;;  %933 = vmatmul.mubr.msk.f32.vlgmr.msra.gmra.mrb[0].mxu1 %vm246_vm0, %v480_v22  ;;  %961 = vmatmul.mubr.msk.f32.vlgmr.msra.gmra.mrb[0].mxu0 %vm246_vm0, %v448_v43  ;;  %v358_v30 = vpop.xlane.xlu0 %357  ;;  %v469_v31 = vmul.f32 %v1329_v52, %v457_v42  ;;  %v437_v32 = vmul.f32 %v1334_v53, %v425_v23 }
 0x158   : > { %v1043_v33 = vpop.eup %1042  ;;  %v413_v34 = vadd.f32 1e-05, %v405_v26  ;;  %v398_v35 = vadd.f32 %v390_v17, %v358_v30 }
 0x159   : > { %v481_v36 = vadd.f32 %v1341_v59, %v469_v31  ;;  %v449_v58 = vadd.f32 %v1346_v60, %v437_v32  ;;  %v458_v57 = vmul.f32 %v1043_v33, %v1219_v2  ;;  %v426_v21 = vmul.f32 %v1043_v33, %v1216_v1 }
 0x15a   : > { %1048 = vrsqrt.f32 %v413_v34  ;;  %v406_v38 = vmul.f32 0.0078125, %v398_v35 }
 0x15b   : > { %935 = vmatprep.mubr.msk.f32.mxu1 %vm246_vm0, %v481_v36  ;;  %963 = vmatprep.mubr.msk.f32.mxu0 %vm246_vm0, %v449_v58  ;;  %v470_v39 = vmul.f32 %v1329_v52, %v458_v57  ;;  %v438_v40 = vmul.f32 %v1334_v53, %v426_v21 }
 0x15c   : > { %v1045_v41 = vpop.eup %1044  ;;  %v414_v46 = vadd.f32 1e-05, %v406_v38 }
 0x15d   : > { %v482_v47 = vadd.f32 %v1341_v59, %v470_v39  ;;  %v450_v48 = vadd.f32 %v1346_v60, %v438_v40  ;;  %v459_v2 = vmul.f32 %v1045_v41, %v1232_v13  ;;  %v427_v1 = vmul.f32 %v1045_v41, %v1229_v12 }
 0x15e   : > { %1050 = vrsqrt.f32 %v414_v46 }
 0x15f   : > { %936 = vmatmul.mubr.msk.f32.gmra.mrb[2].mxu1 %vm246_vm0, %v482_v47  ;;  %964 = vmatmul.mubr.msk.f32.gmra.mrb[2].mxu0 %vm246_vm0, %v450_v48  ;;  %v471_v49 = vmul.f32 %v1329_v52, %v459_v2  ;;  %v439_v50 = vmul.f32 %v1334_v53, %v427_v1 }
 0x160   : > { %v1047_v51 = vpop.eup %1046 }
 0x161   : > { %v483_v29 = vadd.f32 %v1341_v59, %v471_v49  ;;  %v451_v28 = vadd.f32 %v1346_v60, %v439_v50  ;;  %v460_v54 = vmul.f32 %v1047_v51, %v1244_v16  ;;  %v428_v13 = vmul.f32 %v1047_v51, %v1241_v27 }
 0x163   : > { %938 = vmatprep.mubr.msk.f32.mxu1 %vm246_vm0, %v483_v29  ;;  %966 = vmatprep.mubr.msk.f32.mxu0 %vm246_vm0, %v451_v28  ;;  %v472_v12 = vmul.f32 %v1329_v52, %v460_v54  ;;  %v440_v55 = vmul.f32 %v1334_v53, %v428_v13 }
 0x164   : > { %v1049_v56 = vpop.eup %1048 }
 0x165   : > { %v484_v61 = vadd.f32 %v1341_v59, %v472_v12  ;;  %v452_v62 = vadd.f32 %v1346_v60, %v440_v55  ;;  %v461_v63 = vmul.f32 %v1049_v56, %v1256_v20  ;;  %v429_v45 = vmul.f32 %v1049_v56, %v1253_v37 }
 0x167   : > { %939 = vmatmul.mubr.msk.f32.gmra.mrb[4].mxu1 %vm246_vm0, %v484_v61  ;;  %967 = vmatmul.mubr.msk.f32.gmra.mrb[4].mxu0 %vm246_vm0, %v452_v62  ;;  %v473_v27 = vmul.f32 %v1329_v52, %v461_v63  ;;  %v441_v16 = vmul.f32 %v1334_v53, %v429_v45 }
 0x168   : > { %v1051_v0 = vpop.eup %1050 }
 0x169   : > { %v485_v44 = vadd.f32 %v1341_v59, %v473_v27  ;;  %v453_v3 = vadd.f32 %v1346_v60, %v441_v16  ;;  %v462_v4 = vmul.f32 %v1051_v0, %v1268_v24  ;;  %v430_v20 = vmul.f32 %v1051_v0, %v1265_v25 }
 0x16b   : > { %941 = vmatprep.mubr.msk.f32.mxu1 %vm246_vm0, %v485_v44  ;;  %969 = vmatprep.mubr.msk.f32.mxu0 %vm246_vm0, %v453_v3  ;;  %v474_v37 = vmul.f32 %v1329_v52, %v462_v4  ;;  %v442_v5 = vmul.f32 %v1334_v53, %v430_v20 }
 0x16d   : > { %v486_v6 = vadd.f32 %v1341_v59, %v474_v37  ;;  %v454_v7 = vadd.f32 %v1346_v60, %v442_v5 }
 0x16f   : > { %942 = vmatmul.mubr.msk.f32.gmra.mrb[6].mxu1 %vm246_vm0, %v486_v6  ;;  %970 = vmatmul.mubr.msk.f32.gmra.mrb[6].mxu0 %vm246_vm0, %v454_v7 }
 0x22a   : > { %v934_v24 = vpop.f32.mrb[0].mxu1  ;;  %v962_v25 = vpop.f32.mrb[0].mxu0 }
 0x22b   : > { %v712_v52 = vadd.f32 %v962_v25, %v934_v24  ;;  %v577_v53 = vpop.f32.mrb[1].mxu1  ;;  %v706_v59 = vpop.f32.mrb[1].mxu0 }
 0x22c   : > { %v707_v60 = vadd.f32 %v706_v59, %v577_v53 }
 0x22d   : > { %747 = vst.msk [vmem:[%s1414_s18 + $0x8] sm:$0xff] %vm745_vm1, %v712_v52 }
 0x22e   : > { %746 = vst.msk [vmem:[%s1414_s18] sm:$0xff] %vm745_vm1, %v707_v60 }
 0x232   : > { %v937_v8 = vpop.f32.mrb[2].mxu1  ;;  %v965_v9 = vpop.f32.mrb[2].mxu0 }
 0x233   : > { %v722_v10 = vadd.f32 %v965_v9, %v937_v8  ;;  %v587_v11 = vpop.f32.mrb[3].mxu1  ;;  %v716_v14 = vpop.f32.mrb[3].mxu0 }
 0x234   : > { %v717_v15 = vadd.f32 %v716_v14, %v587_v11 }
 0x235   : > { %749 = vst.msk [vmem:[%s1414_s18 + $0x18] sm:$0xff] %vm745_vm1, %v722_v10 }
 0x236   : > { %748 = vst.msk [vmem:[%s1414_s18 + $0x10] sm:$0xff] %vm745_vm1, %v717_v15 }
 0x23a   : > { %v940_v18 = vpop.f32.mrb[4].mxu1  ;;  %v968_v19 = vpop.f32.mrb[4].mxu0 }
 0x23b   : > { %v732_v22 = vadd.f32 %v968_v19, %v940_v18  ;;  %v597_v43 = vpop.f32.mrb[5].mxu1  ;;  %v726_v42 = vpop.f32.mrb[5].mxu0 }
 0x23c   : > { %v727_v23 = vadd.f32 %v726_v42, %v597_v43 }
 0x23d   : > { %751 = vst.msk [vmem:[%s1414_s18 + $0x28] sm:$0xff] %vm745_vm1, %v732_v22 }
 0x23e   : > { %750 = vst.msk [vmem:[%s1414_s18 + $0x20] sm:$0xff] %vm745_vm1, %v727_v23 }
 0x242   : > { %v943_v26 = vpop.f32.mrb[6].mxu1  ;;  %v971_v17 = vpop.f32.mrb[6].mxu0 }
 0x243   : > { %v742_v30 = vadd.f32 %v971_v17, %v943_v26  ;;  %v607_v31 = vpop.f32.mrb[7].mxu1  ;;  %v736_v32 = vpop.f32.mrb[7].mxu0 }
 0x244   : > { %v737_v33 = vadd.f32 %v736_v32, %v607_v31 }
 0x245   : > { %753 = vst.msk [vmem:[%s1414_s18 + $0x38] sm:$0xff] %vm745_vm1, %v742_v30 }
 0x246   : > { %752 = vst.msk [vmem:[%s1414_s18 + $0x30] sm:$0xff] %vm745_vm1, %v737_v33 }
 0x247 PF: > { %s13_s14 = sadd.s32 1, %s1074_s14   ;;  %s1445_s12 = smov %s1070_s13 }
 0x248   : > { %p10_p5 = scmp.ge.s32.totalorder %s13_s14, 4   ;;  %s1446_s13 = smov %s1448_s15 }
 0x24a   :  { %12 = sbr.rel (!%p10_p5) target bundleno = 2 (0x2), region = 64 }

</bundles_post_ra>
